<compile_context>
chip_gen: v7x
topology: tpu7x:2x2x1
jax: 0.10.0
libtpu: 0.0.40
codegen_flags: <defaults>
</compile_context>

<pallas_src>
import functools

import jax
import jax.numpy as jnp
from jax.experimental import pallas as pl
from jax.experimental.pallas import tpu as pltpu

_LANE = 128


def _row_sum(a):
    # a: (TB, TR, 128) -> (TB, 1), staying 2-D+ throughout.
    return jnp.sum(jnp.sum(a, axis=2), axis=1, keepdims=True)


def _ncc_sums_kernel(x_ref, y_ref, o_ref,
                     sx_ref, sy_ref, sxy_ref, sxx_ref, syy_ref,
                     *, n_true, eps):
    j = pl.program_id(1)

    @pl.when(j == 0)
    def _init():
        sx_ref[...] = jnp.zeros_like(sx_ref)
        sy_ref[...] = jnp.zeros_like(sy_ref)
        sxy_ref[...] = jnp.zeros_like(sxy_ref)
        sxx_ref[...] = jnp.zeros_like(sxx_ref)
        syy_ref[...] = jnp.zeros_like(syy_ref)

    # Stream one (TB, TR, 128) tile of each input; accumulate 5 raw sums.
    x = x_ref[...].astype(jnp.float32)
    y = y_ref[...].astype(jnp.float32)

    sx_ref[...] += _row_sum(x)
    sy_ref[...] += _row_sum(y)
    sxy_ref[...] += _row_sum(x * y)
    sxx_ref[...] += _row_sum(x * x)
    syy_ref[...] += _row_sum(y * y)

    @pl.when(j == pl.num_programs(1) - 1)
    def _finalize():
        inv_n = jnp.float32(1.0 / n_true)
        sx = sx_ref[...]
        sy = sy_ref[...]
        sxy_c = sxy_ref[...] - sx * sy * inv_n   # sum(xc*yc)
        sxx_c = sxx_ref[...] - sx * sx * inv_n   # sum(xc*xc)
        syy_c = syy_ref[...] - sy * sy * inv_n   # sum(yc*yc)
        denom = jnp.sqrt(sxx_c * syy_c) + jnp.float32(eps)
        # Per-row summed NCC: sum_j (xc*yc + eps/n) / denom == (sxy_c + eps)/denom
        o_ref[...] = (sxy_c + jnp.float32(eps)) / denom


def normalized_cross_correlation(x, y, reduction="mean", eps=1e-8):
    """Matches losses.normalized_cross_correlation for NCHW (or any) inputs."""
    shape = x.shape
    b = shape[0]
    xf = x.reshape(b, -1)
    yf = y.reshape(b, -1)
    n = xf.shape[1]                       # true element count per sample

    # ---- tiling decisions -------------------------------------------------
    tb = min(b, 8)                        # batch tile (8 sublane-friendly)
    bp = -(-b // tb) * tb                 # padded batch

    r = -(-n // _LANE)                    # 128-lane rows per sample
    # ~2 MiB per input tile: tb * tr * 128 * 4B <= 2 MiB  =>  tr <= 4096 // tb
    tr_cap = max(8, (4096 // tb) // 8 * 8)
    if r <= tr_cap:
        tr = r                            # full extent on the row axis
    else:
        tr = tr_cap                       # multiple of 8
    rp = -(-r // tr) * tr                 # padded row count
    n_pad = rp * _LANE

    # Zero padding is exact: zeros contribute 0 to all five raw sums and the
    # means divide by the true n.
    xf = jnp.pad(xf, ((0, bp - b), (0, n_pad - n)))
    yf = jnp.pad(yf, ((0, bp - b), (0, n_pad - n)))
    x3 = xf.reshape(bp, rp, _LANE)
    y3 = yf.reshape(bp, rp, _LANE)

    grid = (bp // tb, rp // tr)
    kernel = functools.partial(_ncc_sums_kernel, n_true=n, eps=eps)

    itemsize = jnp.dtype(x.dtype).itemsize
    per_batch = pl.pallas_call(
        kernel,
        out_shape=jax.ShapeDtypeStruct((bp, 1), jnp.float32),
        grid_spec=pltpu.PrefetchScalarGridSpec(
            num_scalar_prefetch=0,
            grid=grid,
            in_specs=[
                pl.BlockSpec((tb, tr, _LANE), lambda i, j: (i, j, 0)),
                pl.BlockSpec((tb, tr, _LANE), lambda i, j: (i, j, 0)),
            ],
            out_specs=pl.BlockSpec((tb, 1), lambda i, j: (i, 0)),
            scratch_shapes=[pltpu.VMEM((tb, 1), jnp.float32)] * 5,
        ),
        compiler_params=pltpu.CompilerParams(
            dimension_semantics=("parallel", "arbitrary"),
        ),
        cost_estimate=pl.CostEstimate(
            flops=10 * b * n,
            transcendentals=b,
            bytes_accessed=2 * b * n * itemsize + 4 * b,
        ),
    )(x3, y3)

    per_batch = per_batch[:b, 0]          # drop padded batch rows
    if reduction == "mean":
        return jnp.mean(per_batch)
    elif reduction == "sum":
        return jnp.sum(per_batch)
    else:
        raise KeyError("unsupported reduction type: %s" % reduction)


class NormalizedCrossCorrelation:
    """JAX/Pallas port of the PyTorch module (no parameters)."""

    def __init__(self, eps=1e-8, reduction="mean"):
        self._eps = eps
        self._reduction = reduction

    def __call__(self, x, y):
        return normalized_cross_correlation(x, y, self._reduction, self._eps)


if __name__ == "__main__":
    key = jax.random.PRNGKey(0)
    kx, ky = jax.random.split(key)
    # NCHW, small shapes: B=2, C=4, H=W=16  ->  N = 1024
    x = jax.random.normal(kx, (2, 4, 16, 16), dtype=jnp.float32)
    y = jax.random.normal(ky, (2, 4, 16, 16), dtype=jnp.float32)

    module = NormalizedCrossCorrelation(eps=1e-8, reduction="mean")
    out = module(x, y)
    jax.block_until_ready(out)

    # Pure-JAX reference (same two-pass math as the PyTorch forward).
    b = x.shape[0]
    xf = x.reshape(b, -1)
    yf = y.reshape(b, -1)
    xc = xf - jnp.mean(xf, axis=1, keepdims=True)
    yc = yf - jnp.mean(yf, axis=1, keepdims=True)
    dev_xy = xc * yc
    sxx = jnp.sum(xc * xc, axis=1, keepdims=True)
    syy = jnp.sum(yc * yc, axis=1, keepdims=True)
    ncc = (dev_xy + 1e-8 / dev_xy.shape[1]) / (jnp.sqrt(sxx * syy) + 1e-8)
    ref = jnp.mean(jnp.sum(ncc, axis=1))

    assert jnp.allclose(out, ref, rtol=1e-4, atol=1e-6), (out, ref)
    print("KERNEL_OK")
</pallas_src>

<mosaic_0001>
module attributes {stable_mosaic.version = 11 : i64} {
  func.func @_ncc_sums_kernel(%arg0: i32, %arg1: i32, %arg2: memref<2x8x128xf32, #tpu.memory_space<vmem>>, %arg3: memref<2x8x128xf32, #tpu.memory_space<vmem>>, %arg4: memref<2x1xf32, #tpu.memory_space<vmem>>, %arg5: memref<2x1xf32, #tpu.memory_space<vmem>>, %arg6: memref<2x1xf32, #tpu.memory_space<vmem>>, %arg7: memref<2x1xf32, #tpu.memory_space<vmem>>, %arg8: memref<2x1xf32, #tpu.memory_space<vmem>>, %arg9: memref<2x1xf32, #tpu.memory_space<vmem>>) attributes {dimension_semantics = [#tpu.dimension_semantics<parallel>, #tpu.dimension_semantics<arbitrary>], iteration_bounds = array<i64: 1, 1>, scalar_prefetch = 0 : i64, scratch_operands = 5 : i64, tpu.core_type = #tpu.core_type<tc>, window_params = [{transform_indices = @transform_0, window_bounds = array<i64: 2, 8, 128>}, {transform_indices = @transform_1, window_bounds = array<i64: 2, 8, 128>}, {transform_indices = @transform_2, window_bounds = array<i64: 2, 1>}]} {
    %c0_i32 = arith.constant 0 : i32
    %0 = arith.cmpi eq, %arg1, %c0_i32 : i32
    %1 = arith.extui %0 : i1 to i32
    %c0_i32_0 = arith.constant 0 : i32
    %2 = arith.cmpi ne, %1, %c0_i32_0 : i32
    scf.if %2 {
      %cst_37 = arith.constant 0.000000e+00 : f32
      %41 = vector.broadcast %cst_37 : f32 to vector<2x1xf32>
      %c0_38 = arith.constant 0 : index
      %c0_39 = arith.constant 0 : index
      %42 = vector.load %arg5[%c0_38, %c0_39] : memref<2x1xf32, #tpu.memory_space<vmem>>, vector<2x1xf32>
      tpu.vector_store %arg5[%c0_38, %c0_39], %41 {strides = array<i32>} : memref<2x1xf32, #tpu.memory_space<vmem>>, vector<2x1xf32>,
      %cst_40 = arith.constant 0.000000e+00 : f32
      %43 = vector.broadcast %cst_40 : f32 to vector<2x1xf32>
      %c0_41 = arith.constant 0 : index
      %c0_42 = arith.constant 0 : index
      %44 = vector.load %arg6[%c0_41, %c0_42] : memref<2x1xf32, #tpu.memory_space<vmem>>, vector<2x1xf32>
      tpu.vector_store %arg6[%c0_41, %c0_42], %43 {strides = array<i32>} : memref<2x1xf32, #tpu.memory_space<vmem>>, vector<2x1xf32>,
      %cst_43 = arith.constant 0.000000e+00 : f32
      %45 = vector.broadcast %cst_43 : f32 to vector<2x1xf32>
      %c0_44 = arith.constant 0 : index
      %c0_45 = arith.constant 0 : index
      %46 = vector.load %arg7[%c0_44, %c0_45] : memref<2x1xf32, #tpu.memory_space<vmem>>, vector<2x1xf32>
      tpu.vector_store %arg7[%c0_44, %c0_45], %45 {strides = array<i32>} : memref<2x1xf32, #tpu.memory_space<vmem>>, vector<2x1xf32>,
      %cst_46 = arith.constant 0.000000e+00 : f32
      %47 = vector.broadcast %cst_46 : f32 to vector<2x1xf32>
      %c0_47 = arith.constant 0 : index
      %c0_48 = arith.constant 0 : index
      %48 = vector.load %arg8[%c0_47, %c0_48] : memref<2x1xf32, #tpu.memory_space<vmem>>, vector<2x1xf32>
      tpu.vector_store %arg8[%c0_47, %c0_48], %47 {strides = array<i32>} : memref<2x1xf32, #tpu.memory_space<vmem>>, vector<2x1xf32>,
      %cst_49 = arith.constant 0.000000e+00 : f32
      %49 = vector.broadcast %cst_49 : f32 to vector<2x1xf32>
      %c0_50 = arith.constant 0 : index
      %c0_51 = arith.constant 0 : index
      %50 = vector.load %arg9[%c0_50, %c0_51] : memref<2x1xf32, #tpu.memory_space<vmem>>, vector<2x1xf32>
      tpu.vector_store %arg9[%c0_50, %c0_51], %49 {strides = array<i32>} : memref<2x1xf32, #tpu.memory_space<vmem>>, vector<2x1xf32>,
    } else {
    }
    %c0 = arith.constant 0 : index
    %c0_1 = arith.constant 0 : index
    %c0_2 = arith.constant 0 : index
    %3 = vector.load %arg2[%c0, %c0_1, %c0_2] : memref<2x8x128xf32, #tpu.memory_space<vmem>>, vector<2x8x128xf32>
    %c0_3 = arith.constant 0 : index
    %c0_4 = arith.constant 0 : index
    %c0_5 = arith.constant 0 : index
    %4 = vector.load %arg3[%c0_3, %c0_4, %c0_5] : memref<2x8x128xf32, #tpu.memory_space<vmem>>, vector<2x8x128xf32>
    %c0_6 = arith.constant 0 : index
    %c0_7 = arith.constant 0 : index
    %5 = vector.load %arg5[%c0_6, %c0_7] : memref<2x1xf32, #tpu.memory_space<vmem>>, vector<2x1xf32>
    %cst = arith.constant dense<0.000000e+00> : vector<2x8xf32>
    %6 = vector.multi_reduction <add>, %3, %cst [2] : vector<2x8x128xf32> to vector<2x8xf32>
    %cst_8 = arith.constant dense<0.000000e+00> : vector<2xf32>
    %7 = vector.multi_reduction <add>, %6, %cst_8 [1] : vector<2x8xf32> to vector<2xf32>
    %8 = vector.shape_cast %7 : vector<2xf32> to vector<2x1xf32>
    %9 = arith.addf %5, %8 : vector<2x1xf32>
    %c0_9 = arith.constant 0 : index
    %c0_10 = arith.constant 0 : index
    %10 = vector.load %arg5[%c0_9, %c0_10] : memref<2x1xf32, #tpu.memory_space<vmem>>, vector<2x1xf32>
    tpu.vector_store %arg5[%c0_9, %c0_10], %9 {strides = array<i32>} : memref<2x1xf32, #tpu.memory_space<vmem>>, vector<2x1xf32>,
    %c0_11 = arith.constant 0 : index
    %c0_12 = arith.constant 0 : index
    %11 = vector.load %arg6[%c0_11, %c0_12] : memref<2x1xf32, #tpu.memory_space<vmem>>, vector<2x1xf32>
    %cst_13 = arith.constant dense<0.000000e+00> : vector<2x8xf32>
    %12 = vector.multi_reduction <add>, %4, %cst_13 [2] : vector<2x8x128xf32> to vector<2x8xf32>
    %cst_14 = arith.constant dense<0.000000e+00> : vector<2xf32>
    %13 = vector.multi_reduction <add>, %12, %cst_14 [1] : vector<2x8xf32> to vector<2xf32>
    %14 = vector.shape_cast %13 : vector<2xf32> to vector<2x1xf32>
    %15 = arith.addf %11, %14 : vector<2x1xf32>
    %c0_15 = arith.constant 0 : index
    %c0_16 = arith.constant 0 : index
    %16 = vector.load %arg6[%c0_15, %c0_16] : memref<2x1xf32, #tpu.memory_space<vmem>>, vector<2x1xf32>
    tpu.vector_store %arg6[%c0_15, %c0_16], %15 {strides = array<i32>} : memref<2x1xf32, #tpu.memory_space<vmem>>, vector<2x1xf32>,
    %c0_17 = arith.constant 0 : index
    %c0_18 = arith.constant 0 : index
    %17 = vector.load %arg7[%c0_17, %c0_18] : memref<2x1xf32, #tpu.memory_space<vmem>>, vector<2x1xf32>
    %18 = arith.mulf %3, %4 : vector<2x8x128xf32>
    %cst_19 = arith.constant dense<0.000000e+00> : vector<2x8xf32>
    %19 = vector.multi_reduction <add>, %18, %cst_19 [2] : vector<2x8x128xf32> to vector<2x8xf32>
    %cst_20 = arith.constant dense<0.000000e+00> : vector<2xf32>
    %20 = vector.multi_reduction <add>, %19, %cst_20 [1] : vector<2x8xf32> to vector<2xf32>
    %21 = vector.shape_cast %20 : vector<2xf32> to vector<2x1xf32>
    %22 = arith.addf %17, %21 : vector<2x1xf32>
    %c0_21 = arith.constant 0 : index
    %c0_22 = arith.constant 0 : index
    %23 = vector.load %arg7[%c0_21, %c0_22] : memref<2x1xf32, #tpu.memory_space<vmem>>, vector<2x1xf32>
    tpu.vector_store %arg7[%c0_21, %c0_22], %22 {strides = array<i32>} : memref<2x1xf32, #tpu.memory_space<vmem>>, vector<2x1xf32>,
    %c0_23 = arith.constant 0 : index
    %c0_24 = arith.constant 0 : index
    %24 = vector.load %arg8[%c0_23, %c0_24] : memref<2x1xf32, #tpu.memory_space<vmem>>, vector<2x1xf32>
    %25 = arith.mulf %3, %3 : vector<2x8x128xf32>
    %cst_25 = arith.constant dense<0.000000e+00> : vector<2x8xf32>
    %26 = vector.multi_reduction <add>, %25, %cst_25 [2] : vector<2x8x128xf32> to vector<2x8xf32>
    %cst_26 = arith.constant dense<0.000000e+00> : vector<2xf32>
    %27 = vector.multi_reduction <add>, %26, %cst_26 [1] : vector<2x8xf32> to vector<2xf32>
    %28 = vector.shape_cast %27 : vector<2xf32> to vector<2x1xf32>
    %29 = arith.addf %24, %28 : vector<2x1xf32>
    %c0_27 = arith.constant 0 : index
    %c0_28 = arith.constant 0 : index
    %30 = vector.load %arg8[%c0_27, %c0_28] : memref<2x1xf32, #tpu.memory_space<vmem>>, vector<2x1xf32>
    tpu.vector_store %arg8[%c0_27, %c0_28], %29 {strides = array<i32>} : memref<2x1xf32, #tpu.memory_space<vmem>>, vector<2x1xf32>,
    %c0_29 = arith.constant 0 : index
    %c0_30 = arith.constant 0 : index
    %31 = vector.load %arg9[%c0_29, %c0_30] : memref<2x1xf32, #tpu.memory_space<vmem>>, vector<2x1xf32>
    %32 = arith.mulf %4, %4 : vector<2x8x128xf32>
    %cst_31 = arith.constant dense<0.000000e+00> : vector<2x8xf32>
    %33 = vector.multi_reduction <add>, %32, %cst_31 [2] : vector<2x8x128xf32> to vector<2x8xf32>
    %cst_32 = arith.constant dense<0.000000e+00> : vector<2xf32>
    %34 = vector.multi_reduction <add>, %33, %cst_32 [1] : vector<2x8xf32> to vector<2xf32>
    %35 = vector.shape_cast %34 : vector<2xf32> to vector<2x1xf32>
    %36 = arith.addf %31, %35 : vector<2x1xf32>
    %c0_33 = arith.constant 0 : index
    %c0_34 = arith.constant 0 : index
    %37 = vector.load %arg9[%c0_33, %c0_34] : memref<2x1xf32, #tpu.memory_space<vmem>>, vector<2x1xf32>
    tpu.vector_store %arg9[%c0_33, %c0_34], %36 {strides = array<i32>} : memref<2x1xf32, #tpu.memory_space<vmem>>, vector<2x1xf32>,
    %c0_i32_35 = arith.constant 0 : i32
    %38 = arith.cmpi eq, %arg1, %c0_i32_35 : i32
    %39 = arith.extui %38 : i1 to i32
    %c0_i32_36 = arith.constant 0 : i32
    %40 = arith.cmpi ne, %39, %c0_i32_36 : i32
    scf.if %40 {
      %c0_37 = arith.constant 0 : index
      %c0_38 = arith.constant 0 : index
      %41 = vector.load %arg5[%c0_37, %c0_38] : memref<2x1xf32, #tpu.memory_space<vmem>>, vector<2x1xf32>
      %c0_39 = arith.constant 0 : index
      %c0_40 = arith.constant 0 : index
      %42 = vector.load %arg6[%c0_39, %c0_40] : memref<2x1xf32, #tpu.memory_space<vmem>>, vector<2x1xf32>
      %c0_41 = arith.constant 0 : index
      %c0_42 = arith.constant 0 : index
      %43 = vector.load %arg7[%c0_41, %c0_42] : memref<2x1xf32, #tpu.memory_space<vmem>>, vector<2x1xf32>
      %44 = arith.mulf %41, %42 : vector<2x1xf32>
      %cst_43 = arith.constant 9.765625E-4 : f32
      %45 = vector.broadcast %cst_43 : f32 to vector<2x1xf32>
      %46 = arith.mulf %44, %45 : vector<2x1xf32>
      %47 = arith.subf %43, %46 : vector<2x1xf32>
      %c0_44 = arith.constant 0 : index
      %c0_45 = arith.constant 0 : index
      %48 = vector.load %arg8[%c0_44, %c0_45] : memref<2x1xf32, #tpu.memory_space<vmem>>, vector<2x1xf32>
      %49 = arith.mulf %41, %41 : vector<2x1xf32>
      %cst_46 = arith.constant 9.765625E-4 : f32
      %50 = vector.broadcast %cst_46 : f32 to vector<2x1xf32>
      %51 = arith.mulf %49, %50 : vector<2x1xf32>
      %52 = arith.subf %48, %51 : vector<2x1xf32>
      %c0_47 = arith.constant 0 : index
      %c0_48 = arith.constant 0 : index
      %53 = vector.load %arg9[%c0_47, %c0_48] : memref<2x1xf32, #tpu.memory_space<vmem>>, vector<2x1xf32>
      %54 = arith.mulf %42, %42 : vector<2x1xf32>
      %cst_49 = arith.constant 9.765625E-4 : f32
      %55 = vector.broadcast %cst_49 : f32 to vector<2x1xf32>
      %56 = arith.mulf %54, %55 : vector<2x1xf32>
      %57 = arith.subf %53, %56 : vector<2x1xf32>
      %58 = arith.mulf %52, %57 : vector<2x1xf32>
      %59 = math.sqrt %58 : vector<2x1xf32>
      %cst_50 = arith.constant 9.99999993E-9 : f32
      %60 = vector.broadcast %cst_50 : f32 to vector<2x1xf32>
      %61 = arith.addf %59, %60 : vector<2x1xf32>
      %cst_51 = arith.constant 9.99999993E-9 : f32
      %62 = vector.broadcast %cst_51 : f32 to vector<2x1xf32>
      %63 = arith.addf %47, %62 : vector<2x1xf32>
      %64 = arith.divf %63, %61 : vector<2x1xf32>
      %c0_52 = arith.constant 0 : index
      %c0_53 = arith.constant 0 : index
      %65 = vector.load %arg4[%c0_52, %c0_53] : memref<2x1xf32, #tpu.memory_space<vmem>>, vector<2x1xf32>
      tpu.vector_store %arg4[%c0_52, %c0_53], %64 {strides = array<i32>} : memref<2x1xf32, #tpu.memory_space<vmem>>, vector<2x1xf32>,
    } else {
    }
    return
  }
  func.func @transform_0(%arg0: i32, %arg1: i32) -> (i32, i32, i32) {
    %c0_i32 = arith.constant 0 : i32
    %c0_i32_0 = arith.constant 0 : i32
    return %arg0, %arg1, %c0_i32 : i32, i32, i32
  }
  func.func @transform_1(%arg0: i32, %arg1: i32) -> (i32, i32, i32) {
    %c0_i32 = arith.constant 0 : i32
    %c0_i32_0 = arith.constant 0 : i32
    return %arg0, %arg1, %c0_i32 : i32, i32, i32
  }
  func.func @transform_2(%arg0: i32, %arg1: i32) -> (i32, i32) {
    %c0_i32 = arith.constant 0 : i32
    %c0_i32_0 = arith.constant 0 : i32
    return %arg0, %c0_i32 : i32, i32
  }
}

</mosaic_0001>

<bundles_post_ra>
// kernel: tpu_custom_call.1
= control target key start
LH: loop header
LB: loop body
LE: loop exit
PB: predicated region body
PF: predicated region fallthrough
CT: control target
= control target key end

     0   :  { %7 = vsyncpa [#allocation8], 0  ;;  %s335_s0 = inlined_call_operand.hbm [shape: f32[2,8,128], index: 0, kind: input, shape index: {}]   ;;  %s336_s1 = inlined_call_operand.hbm [shape: f32[2,8,128], index: 1, kind: input, shape index: {}]   ;;  %s337_s2 = inlined_call_operand.vmem [shape: f32[2,1], index: 2, kind: output, shape index: {}]  }
   0x1   :  { %8 = vsyncpa [#allocation10], 0  ;;  %s267_s9 = smov [#allocation7]   ;;  %s219_s13 = scalar_lea.hbm %s335_s0, 256 }
   0x2   :  { %s14_s10 = sshll.u32 %s267_s9, 4  ;;  %p220_p0 = scmp.ne.s32.totalorder %s335_s0, %s219_s13  ;;  %s15_s10 = int_to_ptr.vmem [resolvable:$true] %s14_s10 }
   0x3   :  { %p223_p1 = scmp.lt.u32.totalorder %s219_s13, %s335_s0 }
   0x5   :  { %p225_p2 = pnand %p223_p1, %p220_p0 }
   0x7   :  { %228 = shalt.err (!%p225_p2)
}
   0x8   :  { %s229_s18 = scalar_lea.vmem %s15_s10, 256  ;;  %p234_p4 = scmp.lt.s32.totalorder %s15_s10, %s15_s10 }
   0x9   :  { %p230_p3 = scmp.ne.s32.totalorder %s15_s10, %s229_s18  ;;  %p235_p5 = scmp.lt.s32.totalorder %s229_s18, %s229_s18 }
   0xb   :  { %p236_p6 = por %p235_p5, %p234_p4 }
   0xd   :  { %p237_p7 = pnand %p236_p6, %p230_p3 }
   0xf   :  { %240 = shalt.err (!%p237_p7)
}
  0x10   :  { %s268_s19 = smov 128   ;;  %s269_s20 = smov 8  }
  0x11   :  { %20 = dma.hbm_to_vmem [thread:$0]  %s335_s0, 256, %s15_s10, [#allocation8], %s268_s19, %s268_s19, %s269_s20  }
  0x12   :  { %s270_s23 = smov [#allocation9]   ;;  %s241_s27 = scalar_lea.hbm %s336_s1, 256 }
  0x13   :  { %s26_s24 = sshll.u32 %s270_s23, 4  ;;  %p242_p8 = scmp.ne.s32.totalorder %s336_s1, %s241_s27  ;;  %s27_s24 = int_to_ptr.vmem [resolvable:$true] %s26_s24 }
  0x14   :  { %p245_p9 = scmp.lt.u32.totalorder %s241_s27, %s336_s1 }
  0x16   :  { %p247_p10 = pnand %p245_p9, %p242_p8 }
  0x18   :  { %250 = shalt.err (!%p247_p10)
}
  0x19   :  { %s251_s4 = scalar_lea.vmem %s27_s24, 256  ;;  %p256_p12 = scmp.lt.s32.totalorder %s27_s24, %s27_s24 }
  0x1a   :  { %p252_p11 = scmp.ne.s32.totalorder %s27_s24, %s251_s4  ;;  %p257_p13 = scmp.lt.s32.totalorder %s251_s4, %s251_s4 }
  0x1c   :  { %p258_p0 = por %p257_p13, %p256_p12 }
  0x1e   :  { %p259_p1 = pnand %p258_p0, %p252_p11 }
  0x20   :  { %262 = shalt.err (!%p259_p1)
}
  0x21   :  { %32 = dma.hbm_to_vmem [thread:$0]  %s336_s1, 256, %s27_s24, [#allocation10], %s268_s19, %s268_s19, %s269_s20  }
  0x22   :  { %263 = dma.done.wait [#allocation8], 256  }
  0x23   :  { %264 = vsyncadd [#allocation8], 4294967040 }
  0x24   :  { %265 = dma.done.wait [#allocation10], 256  }
  0x25   :  { %266 = vsyncadd [#allocation10], 4294967040  ;;  %v51_v0 = vld [vmem:[#allocation9] sm:$0xff]  ;;  %v49_v1 = vld [vmem:[#allocation7] sm:$0xff]  ;;  %vm43_vm0 = vcmask 1024   ;;  %v271_v10 = vmov 0.0   ;;  %v60_v11 = vlaneseq }
  0x26   :  { %81 = vadd.xlane.f32.xlu1 %v51_v0  ;;  %54 = vadd.xlane.f32.xlu0 %v49_v1  ;;  %v52_v2 = vld [vmem:[#allocation9 + $0x8] sm:$0xff]  ;;  %v50_v3 = vld [vmem:[#allocation7 + $0x8] sm:$0xff]  ;;  %v127_v5 = vmul.f32 %v49_v1, %v49_v1  ;;  %v151_v7 = vmul.f32 %v51_v0, %v51_v0  ;;  %v103_v9 = vmul.f32 %v51_v0, %v49_v1  ;;  %vm70_vm1 = vcmask 1041409  }
  0x27   :  { %v128_v4 = vmul.f32 %v50_v3, %v50_v3  ;;  %v152_v6 = vmul.f32 %v52_v2, %v52_v2  ;;  %v104_v8 = vmul.f32 %v52_v2, %v50_v3  ;;  %45 = vst.msk [vmem:[#allocation3] sm:$0x3] %vm43_vm0, %v271_v10  ;;  %44 = vst.msk [vmem:[#allocation2] sm:$0x3] %vm43_vm0, %v271_v10  ;;  %v61_v12 = vand.u32 127, %v60_v11 }
  0x28   :  { %46 = vst.msk [vmem:[#allocation4] sm:$0x3] %vm43_vm0, %v271_v10  ;;  %47 = vst.msk [vmem:[#allocation5] sm:$0x3] %vm43_vm0, %v271_v10  ;;  %v63_v13 = vshrl.u32 %v60_v11, 7  ;;  %vm73_vm2 = vcmask 58368  }
  0x29   :  { %48 = vst.msk [vmem:[#allocation6] sm:$0x3] %vm43_vm0, %v271_v10 }
  0x2a   :  { %83 = vadd.xlane.f32.xlu1 %v52_v2  ;;  %56 = vadd.xlane.f32.xlu0 %v50_v3  ;;  %v64_v16 = vsub.s32 %v61_v12, %v63_v13 }
  0x2e   :  { %131 = vadd.xlane.f32.xlu1 %v128_v4  ;;  %129 = vadd.xlane.f32.xlu0 %v127_v5  ;;  %v80_v45 = vld [vmem:[#allocation3] sm:$0x3]  ;;  %v53_v46 = vld [vmem:[#allocation2] sm:$0x3] }
  0x2f   :  { %v126_v51 = vld [vmem:[#allocation5] sm:$0x3]  ;;  %v102_v59 = vld [vmem:[#allocation4] sm:$0x3] }
  0x30   :  { %v150_v54 = vld [vmem:[#allocation6] sm:$0x3] }
  0x32   :  { %155 = vadd.xlane.f32.xlu1 %v152_v6  ;;  %153 = vadd.xlane.f32.xlu0 %v151_v7 }
  0x36   :  { %107 = vadd.xlane.f32.xlu1 %v104_v8  ;;  %105 = vadd.xlane.f32.xlu0 %v103_v9 }
  0xb3   :  { %v82_v14 = vpop.xlane.xlu1 %81  ;;  %v55_v15 = vpop.xlane.xlu0 %54 }
  0xb4   :  { %v90_v19 = vrot.slane %v82_v14, %v64_v16  ;;  %v65_v20 = vrot.slane %v55_v15, %v64_v16 }
  0xb7   :  { %v84_v17 = vpop.xlane.xlu1 %83  ;;  %v57_v18 = vpop.xlane.xlu0 %56 }
  0xb8   :  { %v94_v21 = vrot.slane %v84_v17, %v64_v16  ;;  %v69_v22 = vrot.slane %v57_v18, %v64_v16 }
  0xba   :  { %v95_v23 = vsel %vm70_vm1, %v94_v21, %v90_v19  ;;  %v71_v24 = vsel %vm70_vm1, %v69_v22, %v65_v20 }
  0xbb   :  { %v132_v25 = vpop.xlane.xlu1 %131  ;;  %v130_v26 = vpop.xlane.xlu0 %129  ;;  %v97_v27 = vsel %vm73_vm2, %v95_v23, 0.0  ;;  %v74_v28 = vsel %vm73_vm2, %v71_v24, 0.0 }
  0xbc   :  { %v142_v29 = vrot.slane %v132_v25, %v64_v16  ;;  %v138_v30 = vrot.slane %v130_v26, %v64_v16  ;;  %98 = vadd.xlane.f32.xlu1 %v97_v27  ;;  %75 = vadd.xlane.f32.xlu0 %v74_v28 }
  0xbe   :  { %v143_v31 = vsel %vm70_vm1, %v142_v29, %v138_v30 }
  0xbf   :  { %v156_v32 = vpop.xlane.xlu1 %155  ;;  %v154_v33 = vpop.xlane.xlu0 %153  ;;  %v145_v34 = vsel %vm73_vm2, %v143_v31, 0.0 }
  0xc0   :  { %v166_v35 = vrot.slane %v156_v32, %v64_v16  ;;  %v162_v36 = vrot.slane %v154_v33, %v64_v16  ;;  %146 = vadd.xlane.f32.xlu0 %v145_v34 }
  0xc2   :  { %v167_v37 = vsel %vm70_vm1, %v166_v35, %v162_v36 }
  0xc3   :  { %v108_v38 = vpop.xlane.xlu1 %107  ;;  %v106_v39 = vpop.xlane.xlu0 %105  ;;  %v169_v40 = vsel %vm73_vm2, %v167_v37, 0.0 }
  0xc4   :  { %v118_v41 = vrot.slane %v108_v38, %v64_v16  ;;  %v114_v42 = vrot.slane %v106_v39, %v64_v16  ;;  %170 = vadd.xlane.f32.xlu1 %v169_v40 }
  0xc6   :  { %v119_v43 = vsel %vm70_vm1, %v118_v41, %v114_v42 }
  0xc7   :  { %v121_v44 = vsel %vm73_vm2, %v119_v43, 0.0 }
  0xc8   :  { %122 = vadd.xlane.f32.xlu0 %v121_v44 }
 0x149   :  { %v99_v47 = vpop.xlane.xlu1 %98  ;;  %v76_v48 = vpop.xlane.xlu0 %75 }
 0x14a   :  { %v100_v49 = vadd.f32 %v99_v47, %v80_v45  ;;  %v77_v50 = vadd.f32 %v76_v48, %v53_v46 }
 0x14c   :  { %101 = vst.msk [vmem:[#allocation3] sm:$0x3] %vm43_vm0, %v100_v49  ;;  %79 = vst.msk [vmem:[#allocation2] sm:$0x3] %vm43_vm0, %v77_v50 }
 0x14d   :  { %v147_v52 = vpop.xlane.xlu0 %146 }
 0x14e   :  { %v148_v53 = vadd.f32 %v147_v52, %v126_v51 }
 0x150   :  { %149 = vst.msk [vmem:[#allocation5] sm:$0x3] %vm43_vm0, %v148_v53 }
 0x151   :  { %v171_v55 = vpop.xlane.xlu1 %170 }
 0x152   :  { %v172_v56 = vadd.f32 %v171_v55, %v150_v54 }
 0x153   :  { %v178_v57 = vld [vmem:[#allocation3] sm:$0x3]  ;;  %v177_v58 = vld [vmem:[#allocation2] sm:$0x3] }
 0x154   :  { %v184_v60 = vmul.f32 %v177_v58, %v177_v58  ;;  %173 = vst.msk [vmem:[#allocation6] sm:$0x3] %vm43_vm0, %v172_v56  ;;  %v188_v62 = vmul.f32 %v178_v57, %v178_v57  ;;  %v180_v13 = vmul.f32 %v178_v57, %v177_v58 }
 0x155   :  { %v123_v61 = vpop.xlane.xlu0 %122 }
 0x156   :  { %v124_v63 = vadd.f32 %v123_v61, %v102_v59  ;;  %v185_v0 = vmul.f32 0.0009765625, %v184_v60  ;;  %v189_v2 = vmul.f32 0.0009765625, %v188_v62  ;;  %v181_v15 = vmul.f32 0.0009765625, %v180_v13 }
 0x157   :  { %v183_v1 = vld [vmem:[#allocation5] sm:$0x3] }
 0x158   :  { %125 = vst.msk [vmem:[#allocation4] sm:$0x3] %vm43_vm0, %v124_v63  ;;  %v186_v4 = vsub.f32 %v183_v1, %v185_v0 }
 0x15b   :  { %v187_v3 = vld [vmem:[#allocation6] sm:$0x3] }
 0x15c   :  { %v190_v5 = vsub.f32 %v187_v3, %v189_v2 }
 0x15e   :  { %v191_v6 = vmul.f32 %v190_v5, %v186_v4 }
 0x15f   :  { %v179_v14 = vld [vmem:[#allocation4] sm:$0x3] }
 0x160   :  { %215 = vrsqrt.f32 %v191_v6  ;;  %vm194_vm3 = vcmp.eq.f32.partialorder %v191_v6, inf  ;;  %v197_v9 = vand.u32 2147483648, %v191_v6  ;;  %vm196_vm4 = vcmp.eq.f32.partialorder %v191_v6, 0.0 }
 0x161   :  { %v182_v16 = vsub.f32 %v179_v14, %v181_v15 }
 0x163   :  { %v200_v17 = vadd.f32 1e-08, %v182_v16 }
 0x16a   :  { %v216_v7 = vpop.eup %215 }
 0x16b   :  { %v193_v8 = vmul.f32 %v216_v7, %v191_v6 }
 0x16d   :  { %v195_v10 = vsel %vm194_vm3, %v191_v6, %v193_v8 }
 0x16e   :  { %v198_v11 = vsel %vm196_vm4, %v197_v9, %v195_v10 }
 0x16f   :  { %v199_v12 = vadd.f32 1e-08, %v198_v11 }
 0x171   :  { %217 = vrcp.f32 %v199_v12 }
 0x17b   :  { %v218_v18 = vpop.eup %217 }
 0x17c   :  { %v202_v19 = vmul.f32 %v218_v18, %v200_v17 }
 0x17e   :  { %203 = vst.msk [vmem:[%s337_s2] sm:$0x3] %vm43_vm0, %v202_v19 }
 0x17f   :  { %208 = vsyncpa [#allocation8], 1 }
 0x180   :  { %209 = vsyncpa [#allocation10], 1 }

</bundles_post_ra>
